<compile_context>
chip_gen: v7x
topology: tpu7x:2x2x1
jax: 0.10.0
libtpu: 0.0.40
codegen_flags: <defaults>
</compile_context>

<pallas_src>
import math
from typing import NamedTuple

import jax
import jax.numpy as jnp
from jax.experimental import pallas as pl
from jax.experimental.pallas import tpu as pltpu


def _round_up(x: int, m: int) -> int:
    return ((x + m - 1) // m) * m


def _vmem_capacity_bytes() -> int:
    """Physical VMEM of the current chip; conservative default if unknown."""
    try:
        return int(pltpu.get_tpu_info().vmem_capacity_bytes)
    except Exception:
        return 64 * 1024 * 1024  # v7x-class (smallest) -> always safe


# ---------------------------------------------------------------------------
# Kernel
# ---------------------------------------------------------------------------
def _matmul_bias_kernel(x_ref, w_ref, b_ref, o_ref, acc_ref):
    k = pl.program_id(2)
    partial = jnp.dot(x_ref[...], w_ref[...], preferred_element_type=jnp.float32)

    @pl.when(k == 0)
    def _():
        # Direct write on the first K step: saves a zero-init store + reload.
        acc_ref[...] = partial

    @pl.when(k > 0)
    def _():
        acc_ref[...] += partial

    @pl.when(k == pl.num_programs(2) - 1)
    def _():
        # Bias add + cast once per (i, j) output tile, in f32 (v5e-safe).
        o_ref[...] = (acc_ref[...] + b_ref[...]).astype(o_ref.dtype)


# ---------------------------------------------------------------------------
# Tiling / pre-conditioning
# ---------------------------------------------------------------------------
def _choose_kn_tiles(K: int, N: int):
    """Pick (tk, tn, Kp, Np) once per weight matrix, per chip generation."""
    vmem = _vmem_capacity_bytes()
    small_vmem = vmem < 100 * 1024 * 1024  # v7x-class: 64 MiB per TensorCore

    tk_cap = 512 if small_vmem else 1024   # v5e/v6e (128 MiB) can go bigger
    tn_cap = 1024

    tk = min(_round_up(K, 128), tk_cap)
    tn = min(_round_up(N, 128), tn_cap)

    # v7x has 2 TensorCores sharded over "parallel" grid axes.  The classifier
    # workload has a single M block, so make sure N has >= 2 blocks.
    if small_vmem and tn == _round_up(N, 128) and tn >= 256:
        tn = 128 * ((tn // 128 + 1) // 2)

    Kp = _round_up(K, tk)
    Np = _round_up(N, tn)
    return tk, tn, Kp, Np


def _choose_m_tile(M: int, compute_dtype):
    sub = 16 if compute_dtype == jnp.bfloat16 else 8
    if M >= 256:
        # Fill the 256x256 MXU (v6e/v7x); harmless (2 passes) on v5e's 128x128.
        tm = min(_round_up(M, 256), 512)
    else:
        tm = _round_up(M, sub)
    Mp = _round_up(M, tm)
    return tm, Mp


class _CondLinear(NamedTuple):
    """Pre-conditioned (cast + padded) parameters for one linear."""
    wc: jax.Array          # (Kp, Np) compute_dtype, zero-padded
    bf: jax.Array          # (1, Np)  float32, zero-padded
    K: int
    N: int
    Kp: int
    Np: int
    tk: int
    tn: int
    compute_dtype: object


def precondition_linear(w, b, compute_dtype=jnp.bfloat16) -> _CondLinear:
    """Cast + pad weights/bias once so forward never touches them again."""
    K, N = w.shape
    tk, tn, Kp, Np = _choose_kn_tiles(K, N)

    wc = w.astype(compute_dtype)
    if (Kp, Np) != (K, N):
        # Zero padding: K padding is mandatory-zero (summed into outputs).
        wc = jnp.pad(wc, ((0, Kp - K), (0, Np - N)))
    bf = b.astype(jnp.float32).reshape(1, N)
    if Np != N:
        bf = jnp.pad(bf, ((0, 0), (0, Np - N)))
    return _CondLinear(wc=wc, bf=bf, K=K, N=N, Kp=Kp, Np=Np, tk=tk, tn=tn,
                       compute_dtype=compute_dtype)


# ---------------------------------------------------------------------------
# Wrapper
# ---------------------------------------------------------------------------
def linear_pallas_conditioned(x, cond: _CondLinear, *, out_dtype=jnp.float32,
                              allow_fallback=True):
    """y = x @ W + b with pre-conditioned W, b.  x:[M, K] -> y:[M, N]."""
    M, K = x.shape
    assert K == cond.K, (K, cond.K)

    # Tiny-shape fallback: the actual MultiLinear classifier regime
    # (batch ~ 2, Fout <= a few hundred).  A pallas_call launch + pad + slice
    # costs more than the whole matmul here; XLA's fused dot wins.
    if allow_fallback and M <= 16 and cond.K <= 512 and cond.N <= 512:
        xc = x.astype(cond.compute_dtype)
        y = jnp.dot(xc, cond.wc[:K, :cond.N], preferred_element_type=jnp.float32)
        return (y + cond.bf[0, :cond.N]).astype(out_dtype)

    tm, Mp = _choose_m_tile(M, cond.compute_dtype)
    tk, tn, Kp, Np = cond.tk, cond.tn, cond.Kp, cond.Np

    xc = x.astype(cond.compute_dtype)
    if (Mp, Kp) != (M, K):
        xc = jnp.pad(xc, ((0, Mp - M), (0, Kp - K)))  # K pad must stay zero

    grid = (Mp // tm, Np // tn, Kp // tk)

    # VMEM budget: double-buffered x/w/bias tiles + f32 accumulator + out
    # tiles, with headroom, capped at 75% of this generation's physical VMEM.
    itemsize = jnp.dtype(cond.compute_dtype).itemsize
    out_isz = jnp.dtype(out_dtype).itemsize
    est = (2 * (tm * tk + tk * tn) * itemsize
           + 2 * tn * 4                 # bias tiles (f32)
           + tm * tn * 4                # f32 accumulator scratch
           + 2 * tm * tn * out_isz)     # output tiles
    budget_cap = int(_vmem_capacity_bytes() * 0.75)
    vmem_limit = int(min(budget_cap, max(32 * 1024 * 1024, 2 * est)))

    out = pl.pallas_call(
        _matmul_bias_kernel,
        out_shape=jax.ShapeDtypeStruct((Mp, Np), out_dtype),
        grid_spec=pltpu.PrefetchScalarGridSpec(
            num_scalar_prefetch=0,
            grid=grid,
            in_specs=[
                pl.BlockSpec((tm, tk), lambda i, j, k: (i, k)),
                pl.BlockSpec((tk, tn), lambda i, j, k: (k, j)),
                pl.BlockSpec((1, tn), lambda i, j, k: (0, j)),
            ],
            out_specs=pl.BlockSpec((tm, tn), lambda i, j, k: (i, j)),
            scratch_shapes=[pltpu.VMEM((tm, tn), jnp.float32)],
        ),
        compiler_params=pltpu.CompilerParams(
            dimension_semantics=("parallel", "parallel", "arbitrary"),
            vmem_limit_bytes=vmem_limit,
        ),
    )(xc, cond.wc, cond.bf)

    if (Mp, Np) != (M, cond.N):
        out = out[:M, :cond.N]
    return out


def linear_pallas(x, w, b, *, compute_dtype=jnp.bfloat16, out_dtype=jnp.float32,
                  allow_fallback=True):
    """Convenience path for un-conditioned weights (conditions on the fly)."""
    cond = precondition_linear(w, b, compute_dtype=compute_dtype)
    return linear_pallas_conditioned(x, cond, out_dtype=out_dtype,
                                     allow_fallback=allow_fallback)


# ---------------------------------------------------------------------------
# Module port
# ---------------------------------------------------------------------------
class MultiLinearPallas:
    """JAX/Pallas port of MultiLinear (multi-head linear classifier)."""

    def __init__(self, in_features: int, compute_dtype=jnp.bfloat16,
                 out_dtype=jnp.float32):
        self.in_features = in_features
        self.out_features = 0
        self.compute_dtype = compute_dtype
        # out_dtype=jnp.bfloat16 halves logits writeback; default f32 to keep
        # numerics identical to the PyTorch module's output dtype expectations.
        self.out_dtype = out_dtype
        self._task_params = {}   # task_key -> (w [Fin,Fout] f32, b [Fout] f32)
        self._task_cond = {}     # task_key -> _CondLinear (cast + padded)
        self._fused_cond = None  # cached _CondLinear for the all-heads path

    def extend(self, task_key: str, out_features: int, bias: bool = True, *, key):
        # Deterministic init mimicking nn.Linear's uniform(-1/sqrt(fan_in), ...).
        kw, kb = jax.random.split(key)
        bound = 1.0 / math.sqrt(self.in_features)
        w = jax.random.uniform(
            kw, (self.in_features, out_features), jnp.float32, -bound, bound
        )
        if bias:
            b = jax.random.uniform(kb, (out_features,), jnp.float32, -bound, bound)
        else:
            b = jnp.zeros((out_features,), jnp.float32)
        self._task_params[task_key] = (w, b)
        # Pre-condition once here; the forward path never re-casts / re-pads W.
        self._task_cond[task_key] = precondition_linear(w, b, self.compute_dtype)
        self.out_features += out_features
        self._fused_cond = None  # invalidate the fused all-heads cache

    def _get_fused_cond(self) -> _CondLinear:
        if self._fused_cond is None:
            ws = [w for w, _ in self._task_params.values()]
            bs = [b for _, b in self._task_params.values()]
            w_all = jnp.concatenate(ws, axis=1)
            b_all = jnp.concatenate(bs, axis=0)
            self._fused_cond = precondition_linear(w_all, b_all, self.compute_dtype)
        return self._fused_cond

    def __call__(self, inputs, task_key=None):
        # NOTE: `if task_key:` (not `is not None`) to exactly match the PyTorch
        # module, where an empty-string key also means "all heads".
        if task_key:
            cond = self._task_cond[task_key]
        else:
            # All heads + concat(dim=1) == one matmul vs cached fused weights.
            cond = self._get_fused_cond()
        return linear_pallas_conditioned(inputs, cond, out_dtype=self.out_dtype)


# ---------------------------------------------------------------------------
# Self-test
# ---------------------------------------------------------------------------
if __name__ == "__main__":
    key = jax.random.PRNGKey(0)
    k_x, k_a, k_b, k_c, k_x2, k_w2, k_b2 = jax.random.split(key, 7)

    batch, in_features = 2, 32
    x = jax.random.normal(k_x, (batch, in_features), jnp.float32)

    model = MultiLinearPallas(in_features)
    model.extend("taskA", 8, bias=True, key=k_a)
    model.extend("taskB", 16, bias=False, key=k_b)
    model.extend("taskC", 24, bias=True, key=k_c)

    # Pure-JAX reference with the same bf16 operand rounding / f32 accumulation.
    def ref_linear(xr, wr, br, dt):
        xf = xr.astype(dt).astype(jnp.float32)
        wf = wr.astype(dt).astype(jnp.float32)
        return xf @ wf + br.astype(jnp.float32)

    dt = model.compute_dtype

    # Single-head path (tiny shape -> XLA fallback, uses cached conditioned W).
    y_single = jax.block_until_ready(model(x, task_key="taskB"))
    # All-heads + concat path (cached fused weights).
    y_all = jax.block_until_ready(model(x))

    w_b, b_b = model._task_params["taskB"]
    ref_s = ref_linear(x, w_b, b_b, dt)
    ref_a = jnp.concatenate(
        [ref_linear(x, w, b, dt) for w, b in model._task_params.values()], axis=1
    )
    assert y_single.shape == (batch, 16)
    assert y_all.shape == (batch, model.out_features)
    assert jnp.allclose(y_single, ref_s, atol=1e-3, rtol=1e-3)
    assert jnp.allclose(y_all, ref_a, atol=1e-3, rtol=1e-3)

    # Force the Pallas kernel on the tiny classifier shape as well (padding path).
    y_single_pl = jax.block_until_ready(
        linear_pallas_conditioned(x, model._task_cond["taskB"], allow_fallback=False)
    )
    assert jnp.allclose(y_single_pl, ref_s, atol=1e-3, rtol=1e-3)

    # Multi-tile Pallas sanity check: >1 block along N and >1 K step on all gens.
    xm = jax.random.normal(k_x2, (160, 1536), jnp.float32)
    wm = jax.random.normal(k_w2, (1536, 640), jnp.float32) * 0.05
    bm = jax.random.normal(k_b2, (640,), jnp.float32)
    ym = jax.block_until_ready(
        linear_pallas(xm, wm, bm, compute_dtype=dt, allow_fallback=False)
    )
    ref_m = ref_linear(xm, wm, bm, dt)
    assert ym.shape == (160, 640)
    assert jnp.allclose(ym, ref_m, atol=5e-2, rtol=5e-2)

    print("KERNEL_OK")
</pallas_src>

<mosaic_0001>
module attributes {stable_mosaic.version = 11 : i64} {
  func.func @_matmul_bias_kernel(%arg0: i32, %arg1: i32, %arg2: i32, %arg3: memref<16x128xbf16, #tpu.memory_space<vmem>>, %arg4: memref<128x128xbf16, #tpu.memory_space<vmem>>, %arg5: memref<1x128xf32, #tpu.memory_space<vmem>>, %arg6: memref<16x128xf32, #tpu.memory_space<vmem>>, %arg7: memref<16x128xf32, #tpu.memory_space<vmem>>) attributes {dimension_semantics = [#tpu.dimension_semantics<parallel>, #tpu.dimension_semantics<parallel>, #tpu.dimension_semantics<arbitrary>], iteration_bounds = array<i64: 1, 1, 1>, scalar_prefetch = 0 : i64, scratch_operands = 1 : i64, tpu.core_type = #tpu.core_type<tc>, window_params = [{transform_indices = @transform_0, window_bounds = array<i64: 16, 128>}, {transform_indices = @transform_1, window_bounds = array<i64: 128, 128>}, {transform_indices = @transform_2, window_bounds = array<i64: 1, 128>}, {transform_indices = @transform_3, window_bounds = array<i64: 16, 128>}]} {
    %c0 = arith.constant 0 : index
    %c0_0 = arith.constant 0 : index
    %0 = vector.load %arg3[%c0, %c0_0] : memref<16x128xbf16, #tpu.memory_space<vmem>>, vector<16x128xbf16>
    %c0_1 = arith.constant 0 : index
    %c0_2 = arith.constant 0 : index
    %1 = vector.load %arg4[%c0_1, %c0_2] : memref<128x128xbf16, #tpu.memory_space<vmem>>, vector<128x128xbf16>
    %cst = arith.constant dense<0.000000e+00> : vector<16x128xf32>
    %2 = tpu.matmul %0, %1, %cst {dimension_numbers = #tpu.dot_dimension_numbers<[1], [0], [0], [1], [0, 0, 1, 1], [], []>} : vector<16x128xbf16>, vector<128x128xbf16>, vector<16x128xf32> -> vector<16x128xf32>
    %c0_i32 = arith.constant 0 : i32
    %3 = arith.cmpi eq, %arg2, %c0_i32 : i32
    %4 = arith.extui %3 : i1 to i32
    %c0_i32_3 = arith.constant 0 : i32
    %5 = arith.cmpi ne, %4, %c0_i32_3 : i32
    scf.if %5 {
      %c0_8 = arith.constant 0 : index
      %c0_9 = arith.constant 0 : index
      %12 = vector.load %arg7[%c0_8, %c0_9] : memref<16x128xf32, #tpu.memory_space<vmem>>, vector<16x128xf32>
      tpu.vector_store %arg7[%c0_8, %c0_9], %2 {strides = array<i32>} : memref<16x128xf32, #tpu.memory_space<vmem>>, vector<16x128xf32>,
    } else {
    }
    %c0_i32_4 = arith.constant 0 : i32
    %6 = arith.cmpi sgt, %arg2, %c0_i32_4 : i32
    %7 = arith.extui %6 : i1 to i32
    %c0_i32_5 = arith.constant 0 : i32
    %8 = arith.cmpi ne, %7, %c0_i32_5 : i32
    scf.if %8 {
      %c0_8 = arith.constant 0 : index
      %c0_9 = arith.constant 0 : index
      %12 = vector.load %arg7[%c0_8, %c0_9] : memref<16x128xf32, #tpu.memory_space<vmem>>, vector<16x128xf32>
      %13 = arith.addf %12, %2 : vector<16x128xf32>
      %c0_10 = arith.constant 0 : index
      %c0_11 = arith.constant 0 : index
      %14 = vector.load %arg7[%c0_10, %c0_11] : memref<16x128xf32, #tpu.memory_space<vmem>>, vector<16x128xf32>
      tpu.vector_store %arg7[%c0_10, %c0_11], %13 {strides = array<i32>} : memref<16x128xf32, #tpu.memory_space<vmem>>, vector<16x128xf32>,
    } else {
    }
    %c0_i32_6 = arith.constant 0 : i32
    %9 = arith.cmpi eq, %arg2, %c0_i32_6 : i32
    %10 = arith.extui %9 : i1 to i32
    %c0_i32_7 = arith.constant 0 : i32
    %11 = arith.cmpi ne, %10, %c0_i32_7 : i32
    scf.if %11 {
      %c0_8 = arith.constant 0 : index
      %c0_9 = arith.constant 0 : index
      %12 = vector.load %arg7[%c0_8, %c0_9] : memref<16x128xf32, #tpu.memory_space<vmem>>, vector<16x128xf32>
      %c0_10 = arith.constant 0 : index
      %c0_11 = arith.constant 0 : index
      %13 = vector.load %arg5[%c0_10, %c0_11] : memref<1x128xf32, #tpu.memory_space<vmem>>, vector<1x128xf32>
      %14 = vector.broadcast %13 : vector<1x128xf32> to vector<16x128xf32>
      %15 = arith.addf %12, %14 : vector<16x128xf32>
      %c0_12 = arith.constant 0 : index
      %c0_13 = arith.constant 0 : index
      %16 = vector.load %arg6[%c0_12, %c0_13] : memref<16x128xf32, #tpu.memory_space<vmem>>, vector<16x128xf32>
      tpu.vector_store %arg6[%c0_12, %c0_13], %15 {strides = array<i32>} : memref<16x128xf32, #tpu.memory_space<vmem>>, vector<16x128xf32>,
    } else {
    }
    return
  }
  func.func @transform_0(%arg0: i32, %arg1: i32, %arg2: i32) -> (i32, i32) {
    %c0_i32 = arith.constant 0 : i32
    return %arg0, %arg2 : i32, i32
  }
  func.func @transform_1(%arg0: i32, %arg1: i32, %arg2: i32) -> (i32, i32) {
    %c0_i32 = arith.constant 0 : i32
    return %arg2, %arg1 : i32, i32
  }
  func.func @transform_2(%arg0: i32, %arg1: i32, %arg2: i32) -> (i32, i32) {
    %c0_i32 = arith.constant 0 : i32
    %c0_i32_0 = arith.constant 0 : i32
    return %c0_i32, %arg1 : i32, i32
  }
  func.func @transform_3(%arg0: i32, %arg1: i32, %arg2: i32) -> (i32, i32) {
    %c0_i32 = arith.constant 0 : i32
    return %arg0, %arg1 : i32, i32
  }
}

</mosaic_0001>

<bundles_post_ra>
// kernel: tpu_custom_call.1
= control target key start
LH: loop header
LB: loop body
LE: loop exit
PB: predicated region body
PF: predicated region fallthrough
CT: control target
= control target key end

     0   :  { %8 = vsyncpa [#allocation4], 0  ;;  %s404_s0 = inlined_call_operand.hbm [shape: bf16[16,128], index: 0, kind: input, shape index: {}]   ;;  %s405_s1 = inlined_call_operand.hbm [shape: bf16[128,128], index: 1, kind: input, shape index: {}]   ;;  %s406_s2 = inlined_call_operand.vmem [shape: f32[1,128], index: 2, kind: input, shape index: {}]   ;;  %s407_s3 = inlined_call_operand.hbm [shape: f32[16,128], index: 3, kind: output, shape index: {}]  }
   0x1   :  { %9 = vsyncpa [#allocation7], 0 }
   0x2   :  { %10 = vsyncpa [#allocation5], 0  ;;  %s336_s12 = smov [#allocation3]   ;;  %s264_s16 = scalar_lea.hbm %s404_s0, 128 }
   0x3   :  { %s16_s13 = sshll.u32 %s336_s12, 4  ;;  %p265_p0 = scmp.ne.s32.totalorder %s404_s0, %s264_s16  ;;  %s17_s13 = int_to_ptr.vmem [resolvable:$true] %s16_s13 }
   0x4   :  { %p268_p1 = scmp.lt.u32.totalorder %s264_s16, %s404_s0 }
   0x6   :  { %p270_p2 = pnand %p268_p1, %p265_p0 }
   0x8   :  { %273 = shalt.err (!%p270_p2)
}
   0x9   :  { %s274_s21 = scalar_lea.vmem %s17_s13, 128  ;;  %p279_p4 = scmp.lt.s32.totalorder %s17_s13, %s17_s13 }
   0xa   :  { %p275_p3 = scmp.ne.s32.totalorder %s17_s13, %s274_s21  ;;  %p280_p5 = scmp.lt.s32.totalorder %s274_s21, %s274_s21 }
   0xc   :  { %p281_p6 = por %p280_p5, %p279_p4 }
   0xe   :  { %p282_p7 = pnand %p281_p6, %p275_p3 }
  0x10   :  { %285 = shalt.err (!%p282_p7)
}
  0x11   :  { %s337_s22 = smov 64   ;;  %s338_s23 = smov 4  }
  0x12   :  { %22 = dma.hbm_to_vmem [thread:$0]  %s404_s0, 128, %s17_s13, [#allocation4], %s337_s22, %s337_s22, %s338_s23  }
  0x13   :  { %s339_s26 = smov [#allocation6]   ;;  %s286_s30 = scalar_lea.hbm %s405_s1, 1024 }
  0x14   :  { %s28_s27 = sshll.u32 %s339_s26, 4  ;;  %p287_p8 = scmp.ne.s32.totalorder %s405_s1, %s286_s30  ;;  %s29_s27 = int_to_ptr.vmem [resolvable:$true] %s28_s27 }
  0x15   :  { %p290_p9 = scmp.lt.u32.totalorder %s286_s30, %s405_s1 }
  0x17   :  { %p292_p10 = pnand %p290_p9, %p287_p8 }
  0x19   :  { %295 = shalt.err (!%p292_p10)
}
  0x1a   :  { %s296_s8 = scalar_lea.vmem %s29_s27, 1024  ;;  %p301_p12 = scmp.lt.s32.totalorder %s29_s27, %s29_s27 }
  0x1b   :  { %p297_p11 = scmp.ne.s32.totalorder %s29_s27, %s296_s8  ;;  %p302_p13 = scmp.lt.s32.totalorder %s296_s8, %s296_s8 }
  0x1d   :  { %p303_p0 = por %p302_p13, %p301_p12 }
  0x1f   :  { %p304_p1 = pnand %p303_p0, %p297_p11 }
  0x21   :  { %307 = shalt.err (!%p304_p1)
}
  0x22   :  { %34 = dma.hbm_to_vmem [thread:$0]  %s405_s1, 1024, %s29_s27, [#allocation7], %s337_s22, %s337_s22, %s338_s23  }
  0x23   :  { %330 = dma.done.wait [#allocation4], 128  }
  0x24   :  { %331 = vsyncadd [#allocation4], 4294967168 }
  0x25   :  { %332 = dma.done.wait [#allocation7], 1024  }
  0x26   :  { %333 = vsyncadd [#allocation7], 4294966272  ;;  %v340_v0 = vmov 0.0   ;;  %vm341_vm0 = vmmov 0   ;;  %v255_v1 = vld [vmem:[#allocation6] sm:$0xff]   ;;  %v256_v2 = vld [vmem:[#allocation6 + $0x8] sm:$0xff]  }
  0x27   :  { %226 = vmatprep.subr.bf16.mxu0 %v340_v0  ;;  %242 = vmatprep.mubr.msk.bf16.mxu0 %vm341_vm0, %v340_v0  ;;  %v257_v3 = vld [vmem:[#allocation6 + $0x10] sm:$0xff]   ;;  %v258_v4 = vld [vmem:[#allocation6 + $0x18] sm:$0xff]   ;;  %v259_v5 = vld [vmem:[#allocation6 + $0x20] sm:$0xff]   ;;  %s342_s11 = smov [#allocation8]  }
  0x28   :  { %227 = vmatpush3.bf16.msra.mxu0 %v255_v1  ;;  %v260_v6 = vld [vmem:[#allocation6 + $0x28] sm:$0xff]   ;;  %v261_v7 = vld [vmem:[#allocation6 + $0x30] sm:$0xff]   ;;  %v262_v8 = vld [vmem:[#allocation6 + $0x38] sm:$0xff]   ;;  %s194_s12 = sshll.u32 %s342_s11, 4  ;;  %s195_s12 = int_to_ptr.vmem [resolvable:$true] %s194_s12 }
  0x29   :  { %228 = vmatprep.subr.bf16.mxu0 %v340_v0  ;;  %v263_v9 = vld [vmem:[#allocation3] sm:$0xff]   ;;  %s308_s13 = scalar_lea.vmem %s195_s12, 256  ;;  %p313_p3 = scmp.lt.s32.totalorder %s195_s12, %s195_s12 }
  0x2a   :  { %v216_v10 = vld [vmem:[%s406_s2] ss:$0 sm:$0xff]  ;;  %p309_p2 = scmp.ne.s32.totalorder %s195_s12, %s308_s13  ;;  %p314_p4 = scmp.lt.s32.totalorder %s308_s13, %s308_s13 }
  0x2c   :  { %229 = vmatpush3.bf16.msra.mxu0 %v256_v2  ;;  %p315_p5 = por %p314_p4, %p313_p3 }
  0x2d   :  { %230 = vmatprep.subr.bf16.mxu0 %v340_v0 }
  0x2e   :  { %p316_p6 = pnand %p315_p5, %p309_p2 }
  0x30   :  { %231 = vmatpush3.bf16.msra.mxu0 %v257_v3 }
  0x31   :  { %232 = vmatprep.subr.bf16.mxu0 %v340_v0 }
  0x34   :  { %233 = vmatpush3.bf16.msra.mxu0 %v258_v4 }
  0x35   :  { %234 = vmatprep.subr.bf16.mxu0 %v340_v0 }
  0x38   :  { %235 = vmatpush3.bf16.msra.mxu0 %v259_v5 }
  0x39   :  { %236 = vmatprep.subr.bf16.mxu0 %v340_v0 }
  0x3c   :  { %237 = vmatpush3.bf16.msra.mxu0 %v260_v6 }
  0x3d   :  { %238 = vmatprep.subr.bf16.mxu0 %v340_v0 }
  0x40   :  { %239 = vmatpush3.bf16.msra.mxu0 %v261_v7 }
  0x41   :  { %240 = vmatprep.subr.bf16.mxu0 %v340_v0 }
  0x44   :  { %241 = vmatpush3.bf16.msra.mxu0 %v262_v8 }
  0x47   :  { %243 = vmatmul.mubr.bf16.vlgmr.msra.gmra.mrb[0].mxu0 %v263_v9 }
 0x11a   :  { %v150_v11 = vpop.f32.mrb[0].mxu0 }
 0x11b   :  { %v185_v12 = vadd.f32 %v216_v10, %v150_v11  ;;  %v244_v13 = vpop.f32.mrb[1].mxu0 }
 0x11c   :  { %v153_v14 = vpop.f32.mrb[2].mxu0 }
 0x11d   :  { %187 = vst [vmem:[#allocation8] sm:$0xff] %v185_v12  ;;  %v186_v15 = vadd.f32 %v216_v10, %v153_v14  ;;  %v245_v16 = vpop.f32.mrb[3].mxu0 }
 0x11f   :  { %188 = vst [vmem:[#allocation8 + $0x8] sm:$0xff] %v186_v15 }
 0x120   :  { %319 = shalt.err (!%p316_p6)
}
 0x121   :  { %s320_s15 = scalar_lea.hbm %s407_s3, 256 }
 0x122   :  { %p321_p7 = scmp.ne.s32.totalorder %s407_s3, %s320_s15  ;;  %p324_p8 = scmp.lt.u32.totalorder %s320_s15, %s407_s3 }
 0x124   :  { %p326_p9 = pnand %p324_p8, %p321_p7 }
 0x126   :  { %329 = shalt.err (!%p326_p9)
}
 0x127   :  { %s343_s20 = smov 128   ;;  %s344_s21 = smov 8  }
 0x128   :  { %200 = dma.vmem_to_hbm [thread:$0]  %s195_s12, 256, %s407_s3, [#allocation5], %s343_s20, %s343_s20, %s344_s21  }
 0x129   :  { %334 = dma.done.wait [#allocation5], 256  }
 0x12a   :  { %335 = vsyncadd [#allocation5], 4294967040 }
 0x12b   :  { %204 = vsyncpa [#allocation4], 1 }
 0x12c   :  { %205 = vsyncpa [#allocation7], 1 }
 0x12d   :  { %206 = vsyncpa [#allocation5], 1 }

</bundles_post_ra>
